<compile_context>
chip_gen: v7x
topology: tpu7x:2x2x1
jax: 0.10.0
libtpu: 0.0.40
codegen_flags: <defaults>
</compile_context>

<pallas_src>
import jax
import jax.numpy as jnp
from jax.experimental import pallas as pl
from jax.experimental.pallas import tpu as pltpu


def _round_up(x: int, m: int) -> int:
    return (x + m - 1) // m * m


def _focal_pow(base, gamma):
    """base**gamma with cheap special cases (gamma is a trace-time Python float)."""
    g = float(gamma)
    if g == 0.0:
        return jnp.ones_like(base)
    if g.is_integer() and 1.0 <= g <= 8.0:
        out = base
        for _ in range(int(g) - 1):
            out = out * base
        return out
    # Non-integer gamma: fall back to power (log/exp chain on the EUP).
    return jnp.power(base, g)


def _make_focal_loss_kernel(n_true: int, tile_n: int, slices_per_partial: int,
                            gamma: float):
    def kernel(x_ref, t_ref, a_ref, o_ref):
        p_id = pl.program_id(0)   # partial (megacore) index
        s_id = pl.program_id(1)   # slice index within this partial (reduction axis)

        # Zero this partial's lane-accumulator on its first slice.
        @pl.when(s_id == 0)
        def _():
            o_ref[...] = jnp.zeros_like(o_ref)

        x = x_ref[...].astype(jnp.float32)        # (C, T) logits, batch on lanes
        t = t_ref[...]                            # (1, T) int32 class ids
        alpha = a_ref[...].astype(jnp.float32)    # (C, 1) per-class alpha

        C, T = x.shape

        # One-hot along the class (sublane) axis: equivalent of scatter_(1, ids, 1).
        row = jax.lax.broadcasted_iota(jnp.int32, (C, T), 0)
        mask = (row == t).astype(jnp.float32)     # (C, T)

        # Direct log-softmax evaluated at the target class.
        m = jnp.max(x, axis=0, keepdims=True)                     # (1, T)
        denom = jnp.sum(jnp.exp(x - m), axis=0, keepdims=True)    # (1, T)
        x_t = jnp.sum(x * mask, axis=0, keepdims=True)            # (1, T) target logit
        log_p = (x_t - m) - jnp.log(denom)                        # (1, T)
        probs = jnp.exp(log_p)                                    # (1, T)

        # Per-sample alpha gather folded into the same one-hot pass.
        alpha_s = jnp.sum(alpha * mask, axis=0, keepdims=True)    # (1, T)

        focal = _focal_pow(1.0 - probs, gamma)                    # (1, T)

        # Mask out padded columns (global batch index >= true N).
        col0 = (p_id * slices_per_partial + s_id) * tile_n
        col = col0 + jax.lax.broadcasted_iota(jnp.int32, (1, T), 1)
        valid = (col < n_true).astype(jnp.float32)

        # Per-lane partial sums; reduced (and mean-divided) in the wrapper.
        o_ref[...] += valid * (-alpha_s * focal * log_p)

    return kernel


def focal_loss(inputs, targets, alpha, gamma=1.0, size_average=True,
               tile_n=2048, num_partials=2):
    """inputs: (N, C) float logits (any float dtype); targets: (N,) int;
    alpha: (C,) or (C, 1) float (as in the PyTorch module)."""
    N, C = inputs.shape

    # Tile size: lane-dense multiple of 128, clamped so tiny batches stay tiny.
    tile_n = max(128, min(int(tile_n), _round_up(N, 128)))
    tile_n = _round_up(tile_n, 128)
    # Never launch more partials than there are batch tiles (avoids pure-pad work).
    num_partials = max(1, min(int(num_partials), pl.cdiv(N, tile_n)))
    padded_n = _round_up(N, tile_n * num_partials)
    slices_per_partial = padded_n // (tile_n * num_partials)
    pad = padded_n - N

    # Layout plumbing (no math): batch on the lane axis, targets lane-dense.
    # NOTE: dtype is NOT upcast here — native dtype is DMA'd, cast in-kernel.
    x = jnp.transpose(inputs)                                   # (C, N)
    t = targets.astype(jnp.int32)
    if pad:
        x = jnp.pad(x, ((0, 0), (0, pad)))
        t = jnp.pad(t, (0, pad))
    t2 = t.reshape(1, padded_n)
    a2 = jnp.asarray(alpha).reshape(C, 1)

    kernel = _make_focal_loss_kernel(N, tile_n, slices_per_partial, float(gamma))

    partials = pl.pallas_call(
        kernel,
        out_shape=jax.ShapeDtypeStruct((1, num_partials * tile_n), jnp.float32),
        grid_spec=pltpu.PrefetchScalarGridSpec(
            num_scalar_prefetch=0,
            grid=(num_partials, slices_per_partial),
            in_specs=[
                pl.BlockSpec((C, tile_n),
                             lambda p, s: (0, p * slices_per_partial + s)),
                pl.BlockSpec((1, tile_n),
                             lambda p, s: (0, p * slices_per_partial + s)),
                pl.BlockSpec((C, 1), lambda p, s: (0, 0)),
            ],
            out_specs=pl.BlockSpec((1, tile_n), lambda p, s: (0, p)),
        ),
        compiler_params=pltpu.CompilerParams(
            dimension_semantics=("parallel", "arbitrary"),
            vmem_limit_bytes=32 * 1024 * 1024,
        ),
    )(x, t2, a2)

    total = jnp.sum(partials)
    if size_average:
        return total / jnp.float32(N)   # divide by the TRUE N, not the padded one
    return total


def focal_loss_ref(inputs, targets, alpha, gamma=1.0, size_average=True):
    """Plain-JAX reference mirroring the PyTorch forward exactly."""
    N, C = inputs.shape
    p = jax.nn.softmax(inputs.astype(jnp.float32), axis=1)
    mask = jax.nn.one_hot(targets, C, dtype=jnp.float32)
    probs = jnp.sum(p * mask, axis=1, keepdims=True)
    alpha_s = jnp.asarray(alpha).reshape(-1)[targets].reshape(-1, 1).astype(jnp.float32)
    log_p = jnp.log(probs)
    batch_loss = -alpha_s * jnp.power(1.0 - probs, gamma) * log_p
    return jnp.mean(batch_loss) if size_average else jnp.sum(batch_loss)


if __name__ == "__main__":
    # Small, FER-like shapes: batch N=8, class_num C=7
    N, C = 8, 7

    key = jax.random.PRNGKey(0)
    k_x, k_t, k_x2, k_t2 = jax.random.split(key, 4)
    inputs = jax.random.normal(k_x, (N, C), dtype=jnp.float32)
    targets = jax.random.randint(k_t, (N,), 0, C, dtype=jnp.int32)

    # Module __init__ with alpha=None -> torch.ones(class_num, 1)
    alpha = jnp.ones((C, 1), dtype=jnp.float32)

    loss = focal_loss(inputs, targets, alpha, gamma=1.0, size_average=True)
    loss = jax.block_until_ready(loss)
    ref = focal_loss_ref(inputs, targets, alpha, gamma=1.0, size_average=True)
    assert jnp.allclose(loss, ref, atol=1e-5, rtol=1e-5), (loss, ref)

    # Larger ragged batch: exercises multi-tile grid, padding mask, non-uniform
    # alpha, integer-gamma fast path, and sum reduction.
    N2 = 300
    inputs2 = jax.random.normal(k_x2, (N2, C), dtype=jnp.float32)
    targets2 = jax.random.randint(k_t2, (N2,), 0, C, dtype=jnp.int32)
    alpha2 = (jnp.arange(C, dtype=jnp.float32).reshape(C, 1) + 1.0) / C
    loss2 = focal_loss(inputs2, targets2, alpha2, gamma=2.0, size_average=False)
    loss2 = jax.block_until_ready(loss2)
    ref2 = focal_loss_ref(inputs2, targets2, alpha2, gamma=2.0, size_average=False)
    assert jnp.allclose(loss2, ref2, atol=1e-4, rtol=1e-5), (loss2, ref2)

    print("KERNEL_OK")
</pallas_src>

<mosaic_0001>
module attributes {stable_mosaic.version = 11 : i64} {
  func.func @kernel(%arg0: i32, %arg1: i32, %arg2: memref<7x128xf32, #tpu.memory_space<vmem>>, %arg3: memref<1x128xi32, #tpu.memory_space<vmem>>, %arg4: memref<7x1xf32, #tpu.memory_space<vmem>>, %arg5: memref<1x128xf32, #tpu.memory_space<vmem>>) attributes {dimension_semantics = [#tpu.dimension_semantics<parallel>, #tpu.dimension_semantics<arbitrary>], iteration_bounds = array<i64: 1, 1>, scalar_prefetch = 0 : i64, scratch_operands = 0 : i64, tpu.core_type = #tpu.core_type<tc>, window_params = [{transform_indices = @transform_0, window_bounds = array<i64: 7, 128>}, {transform_indices = @transform_1, window_bounds = array<i64: 1, 128>}, {pipeline_mode = #tpu.pipeline_mode<synchronous>, transform_indices = @transform_2, window_bounds = array<i64: 7, 1>}, {transform_indices = @transform_3, window_bounds = array<i64: 1, 128>}]} {
    %c0_i32 = arith.constant 0 : i32
    %0 = arith.cmpi eq, %arg1, %c0_i32 : i32
    %1 = arith.extui %0 : i1 to i32
    %c0_i32_0 = arith.constant 0 : i32
    %2 = arith.cmpi ne, %1, %c0_i32_0 : i32
    scf.if %2 {
      %cst_15 = arith.constant 0.000000e+00 : f32
      %49 = vector.broadcast %cst_15 : f32 to vector<1x128xf32>
      %c0_16 = arith.constant 0 : index
      %c0_17 = arith.constant 0 : index
      %50 = vector.load %arg5[%c0_16, %c0_17] : memref<1x128xf32, #tpu.memory_space<vmem>>, vector<1x128xf32>
      tpu.vector_store %arg5[%c0_16, %c0_17], %49 {strides = array<i32>} : memref<1x128xf32, #tpu.memory_space<vmem>>, vector<1x128xf32>,
    } else {
    }
    %c0 = arith.constant 0 : index
    %c0_1 = arith.constant 0 : index
    %3 = vector.load %arg2[%c0, %c0_1] : memref<7x128xf32, #tpu.memory_space<vmem>>, vector<7x128xf32>
    %c0_2 = arith.constant 0 : index
    %c0_3 = arith.constant 0 : index
    %4 = vector.load %arg3[%c0_2, %c0_3] : memref<1x128xi32, #tpu.memory_space<vmem>>, vector<1x128xi32>
    %c0_4 = arith.constant 0 : index
    %c0_5 = arith.constant 0 : index
    %5 = vector.load %arg4[%c0_4, %c0_5] : memref<7x1xf32, #tpu.memory_space<vmem>>, vector<7x1xf32>
    %6 = tpu.iota {dimensions = array<i32: 0>} : vector<7x128xi32>
    %7 = vector.broadcast %4 : vector<1x128xi32> to vector<7x128xi32>
    %8 = arith.cmpi eq, %6, %7 : vector<7x128xi32>
    %9 = arith.extui %8 : vector<7x128xi1> to vector<7x128xi32>
    %10 = arith.sitofp %9 : vector<7x128xi32> to vector<7x128xf32>
    %cst = arith.constant dense<0xFF800000> : vector<128xf32>
    %11 = vector.multi_reduction <maximumf>, %3, %cst [0] : vector<7x128xf32> to vector<128xf32>
    %12 = vector.shape_cast %11 : vector<128xf32> to vector<1x128xf32>
    %13 = vector.broadcast %12 : vector<1x128xf32> to vector<7x128xf32>
    %14 = arith.subf %3, %13 : vector<7x128xf32>
    %15 = math.exp %14 : vector<7x128xf32>
    %cst_6 = arith.constant dense<0.000000e+00> : vector<128xf32>
    %16 = vector.multi_reduction <add>, %15, %cst_6 [0] : vector<7x128xf32> to vector<128xf32>
    %17 = vector.shape_cast %16 : vector<128xf32> to vector<1x128xf32>
    %18 = arith.mulf %3, %10 : vector<7x128xf32>
    %cst_7 = arith.constant dense<0.000000e+00> : vector<128xf32>
    %19 = vector.multi_reduction <add>, %18, %cst_7 [0] : vector<7x128xf32> to vector<128xf32>
    %20 = vector.shape_cast %19 : vector<128xf32> to vector<1x128xf32>
    %21 = arith.subf %20, %12 : vector<1x128xf32>
    %22 = math.log %17 : vector<1x128xf32>
    %23 = arith.subf %21, %22 : vector<1x128xf32>
    %24 = math.exp %23 : vector<1x128xf32>
    %25 = vector.broadcast %5 : vector<7x1xf32> to vector<7x128xf32>
    %26 = arith.mulf %25, %10 : vector<7x128xf32>
    %cst_8 = arith.constant dense<0.000000e+00> : vector<128xf32>
    %27 = vector.multi_reduction <add>, %26, %cst_8 [0] : vector<7x128xf32> to vector<128xf32>
    %28 = vector.shape_cast %27 : vector<128xf32> to vector<1x128xf32>
    %cst_9 = arith.constant 1.000000e+00 : f32
    %29 = vector.broadcast %cst_9 : f32 to vector<1x128xf32>
    %30 = arith.subf %29, %24 : vector<1x128xf32>
    %c1_i32 = arith.constant 1 : i32
    %31 = arith.muli %arg0, %c1_i32 : i32
    %32 = arith.addi %31, %arg1 : i32
    %c128_i32 = arith.constant 128 : i32
    %33 = arith.muli %32, %c128_i32 : i32
    %34 = tpu.iota {dimensions = array<i32: 1>} : vector<1x128xi32>
    %35 = vector.broadcast %33 : i32 to vector<1x128xi32>
    %36 = arith.addi %35, %34 : vector<1x128xi32>
    %c8_i32 = arith.constant 8 : i32
    %37 = vector.broadcast %c8_i32 : i32 to vector<1x128xi32>
    %38 = arith.cmpi slt, %36, %37 : vector<1x128xi32>
    %39 = arith.extui %38 : vector<1x128xi1> to vector<1x128xi32>
    %40 = arith.sitofp %39 : vector<1x128xi32> to vector<1x128xf32>
    %c0_10 = arith.constant 0 : index
    %c0_11 = arith.constant 0 : index
    %41 = vector.load %arg5[%c0_10, %c0_11] : memref<1x128xf32, #tpu.memory_space<vmem>>, vector<1x128xf32>
    %cst_12 = arith.constant 0.000000e+00 : f32
    %42 = vector.broadcast %cst_12 : f32 to vector<1x128xf32>
    %43 = arith.subf %42, %28 : vector<1x128xf32>
    %44 = arith.mulf %43, %30 : vector<1x128xf32>
    %45 = arith.mulf %44, %23 : vector<1x128xf32>
    %46 = arith.mulf %40, %45 : vector<1x128xf32>
    %47 = arith.addf %41, %46 : vector<1x128xf32>
    %c0_13 = arith.constant 0 : index
    %c0_14 = arith.constant 0 : index
    %48 = vector.load %arg5[%c0_13, %c0_14] : memref<1x128xf32, #tpu.memory_space<vmem>>, vector<1x128xf32>
    tpu.vector_store %arg5[%c0_13, %c0_14], %47 {strides = array<i32>} : memref<1x128xf32, #tpu.memory_space<vmem>>, vector<1x128xf32>,
    return
  }
  func.func @transform_0(%arg0: i32, %arg1: i32) -> (i32, i32) {
    %c1_i32 = arith.constant 1 : i32
    %0 = arith.muli %arg0, %c1_i32 : i32
    %1 = arith.addi %0, %arg1 : i32
    %c0_i32 = arith.constant 0 : i32
    %c0_i32_0 = arith.constant 0 : i32
    return %c0_i32, %1 : i32, i32
  }
  func.func @transform_1(%arg0: i32, %arg1: i32) -> (i32, i32) {
    %c1_i32 = arith.constant 1 : i32
    %0 = arith.muli %arg0, %c1_i32 : i32
    %1 = arith.addi %0, %arg1 : i32
    %c0_i32 = arith.constant 0 : i32
    %c0_i32_0 = arith.constant 0 : i32
    return %c0_i32, %1 : i32, i32
  }
  func.func @transform_2(%arg0: i32, %arg1: i32) -> (i32, i32) {
    %c0_i32 = arith.constant 0 : i32
    %c0_i32_0 = arith.constant 0 : i32
    %c0_i32_1 = arith.constant 0 : i32
    return %c0_i32, %c0_i32_0 : i32, i32
  }
  func.func @transform_3(%arg0: i32, %arg1: i32) -> (i32, i32) {
    %c0_i32 = arith.constant 0 : i32
    %c0_i32_0 = arith.constant 0 : i32
    return %c0_i32, %arg0 : i32, i32
  }
}

</mosaic_0001>

<bundles_post_ra>
// kernel: tpu_custom_call.1
= control target key start
LH: loop header
LB: loop body
LE: loop exit
PB: predicated region body
PF: predicated region fallthrough
CT: control target
= control target key end

     0   :  { %v185_v1 = vmov 0   ;;  %v186_v2 = vmov 0.0   ;;  %s233_s0 = inlined_call_operand.vmem [shape: f32[7,128], index: 0, kind: input, shape index: {}]   ;;  %s234_s1 = inlined_call_operand.vmem [shape: s32[1,128], index: 1, kind: input, shape index: {}]   ;;  %s235_s2 = inlined_call_operand.vmem [shape: f32[7,1], index: 2, kind: input, shape index: {}]   ;;  %s236_s3 = inlined_call_operand.hbm [shape: f32[1,128], index: 3, kind: output, shape index: {}]  }
   0x1   :  { %v53_v0 = vld [vmem:[%s235_s2] sm:$0x7f]  ;;  %154 = vset.pattern.permute.xlu0 %v185_v1  ;;  %50 = vst [vmem:[#allocation2] sm:$0x1] %v186_v2 }
   0x2   :  { %8 = vsyncpa [#allocation3], 0  ;;  %97 = vperm.xlu0 %154, %v53_v0   ;;  %vm63_vm0 = vcmask 1046528   ;;  %v51_v3 = vld [vmem:[%s233_s0] sm:$0x7f]  ;;  %v54_v13 = vlaneseq  ;;  %s187_s0 = smov [#allocation2]  }
   0x3   :  { %v64_v4 = vsel %vm63_vm0, %v51_v3, -inf  ;;  %v148_v16 = vld [vmem:[%s234_s1] ss:$0 sm:$0xff]  ;;  %s131_s1 = sshll.u32 %s187_s0, 4  ;;  %s132_s1 = int_to_ptr.vmem [resolvable:$true] %s131_s1 }
   0x4   :  { %v65_v5 = vrot.slane %v64_v4, 4  ;;  %v55_v15 = vshrl.u32 %v54_v13, 7  ;;  %v112_v46 = vand.u32 127, %v54_v13  ;;  %s161_s17 = scalar_lea.vmem %s132_s1, 16  ;;  %s165_s18 = scalar_lea.vmem %s132_s1, 32 }
   0x5   :  { %p162_p0 = scmp.ne.s32.totalorder %s132_s1, %s161_s17  ;;  %p166_p1 = scmp.lt.s32.totalorder %s132_s1, %s132_s1 }
   0x6   :  { %v66_v6 = vmax.f32 %v64_v4, %v65_v5  ;;  %vm60_vm1 = vcmp.eq.s32.totalorder %v55_v15, %v148_v16  ;;  %vm115_vm2 = vcmp.lt.s32.totalorder %v112_v46, 8  ;;  %p167_p2 = scmp.lt.s32.totalorder %s165_s18, %s161_s17 }
   0x7   :  { %v149_v19 = vsel %vm60_vm1, 1.0, %v186_v2  ;;  %v150_v52 = vsel %vm115_vm2, 1.0, %v186_v2 }
   0x8   :  { %v67_v7 = vrot.slane %v66_v6, 2  ;;  %v81_v21 = vmul.f32 %v149_v19, %v51_v3  ;;  %v118_v54 = vld [vmem:[#allocation2] sm:$0x1]  ;;  %p168_p3 = por %p167_p2, %p166_p1 }
   0xa   :  { %v68_v8 = vmax.f32 %v66_v6, %v67_v7  ;;  %v82_v23 = vsel %vm63_vm0, %v81_v21, 0.0  ;;  %p169_p4 = pnand %p168_p3, %p162_p0 }
   0xb   :  { %v83_v25 = vrot.slane %v82_v23, 4 }
   0xc   :  { %v69_v9 = vrot.slane %v68_v8, 1 }
   0xd   :  { %v84_v27 = vadd.f32 %v83_v25, %v82_v23 }
   0xe   :  { %v70_v10 = vmax.f32 %v68_v8, %v69_v9 }
   0xf   :  { %v85_v29 = vrot.slane %v84_v27, 2 }
  0x10   :  { %v71_v11 = vsub.f32 %v51_v3, %v70_v10 }
  0x11   :  { %v86_v30 = vadd.f32 %v85_v29, %v84_v27 }
  0x12   :  { %v72_v12 = vmul.f32 1.442695, %v71_v11 }
  0x13   :  { %v87_v31 = vrot.slane %v86_v30, 1 }
  0x14   :  { %155 = vpow2.f32 %v72_v12 }
  0x15   :  { %v88_v32 = vadd.f32 %v87_v31, %v86_v30 }
  0x17   :  { %v89_v34 = vsub.f32 %v88_v32, %v70_v10 }
  0x1e   :  { %v156_v14 = vpop.eup %155 }
  0x1f   :  { %v74_v17 = vsel %vm63_vm0, %v156_v14, 0.0 }
  0x20   :  { %v75_v18 = vrot.slane %v74_v17, 4 }
  0x22   :  { %v76_v20 = vadd.f32 %v75_v18, %v74_v17 }
  0x24   :  { %v77_v22 = vrot.slane %v76_v20, 2 }
  0x26   :  { %v78_v24 = vadd.f32 %v77_v22, %v76_v20 }
  0x28   :  { %v79_v26 = vrot.slane %v78_v24, 1 }
  0x2a   :  { %v80_v28 = vadd.f32 %v79_v26, %v78_v24 }
  0x2c   :  { %157 = vlog2.f32 %v80_v28 }
  0x36   :  { %v158_v33 = vpop.eup %157 }
  0x37   :  { %v91_v35 = vmul.f32 0.6931472, %v158_v33 }
  0x39   :  { %v92_v36 = vsub.f32 %v89_v34, %v91_v35 }
  0x3b   :  { %v93_v37 = vmul.f32 1.442695, %v92_v36 }
  0x3d   :  { %159 = vpow2.f32 %v93_v37 }
  0x47   :  { %v160_v45 = vpop.eup %159 }
  0x48   :  { %v108_v49 = vsub.f32 1.0, %v160_v45 }
  0x81   :  { %v98_v38 = vpop.permute.xlu0 %97 }
  0x82   :  { %v100_v39 = vmul.f32 %v149_v19, %v98_v38 }
  0x84   :  { %v101_v40 = vsel %vm63_vm0, %v100_v39, 0.0 }
  0x85   :  { %v102_v41 = vrot.slane %v101_v40, 4 }
  0x87   :  { %v103_v42 = vadd.f32 %v102_v41, %v101_v40 }
  0x89   :  { %v104_v43 = vrot.slane %v103_v42, 2 }
  0x8b   :  { %v105_v44 = vadd.f32 %v104_v43, %v103_v42 }
  0x8d   :  { %v106_v47 = vrot.slane %v105_v44, 1 }
  0x8f   :  { %v107_v48 = vadd.f32 %v106_v47, %v105_v44 }
  0x91   :  { %v119_v50 = vsub.f32 0.0, %v107_v48 }
  0x93   :  { %v120_v51 = vmul.f32 %v119_v50, %v108_v49 }
  0x95   :  { %v121_v53 = vmul.f32 %v120_v51, %v92_v36 }
  0x97   :  { %v122_v55 = vmul.f32 %v150_v52, %v121_v53 }
  0x99   :  { %v123_v56 = vadd.f32 %v122_v55, %v118_v54 }
  0x9b   :  { %124 = vst [vmem:[#allocation2] sm:$0x1] %v123_v56 }
  0x9c   :  { %172 = shalt.err (!%p169_p4)
}
  0x9d   :  { %s173_s21 = scalar_lea.hbm %s236_s3, 16 }
  0x9e   :  { %p174_p5 = scmp.ne.s32.totalorder %s236_s3, %s173_s21  ;;  %p177_p6 = scmp.lt.u32.totalorder %s173_s21, %s236_s3 }
  0xa0   :  { %p179_p7 = pnand %p177_p6, %p174_p5 }
  0xa2   :  { %182 = shalt.err (!%p179_p7)
}
  0xa3   :  { %134 = dma.vmem_to_hbm [thread:$0]  %s132_s1, 16, %s236_s3, [#allocation3]  }
  0xa4   :  { %183 = dma.done.wait [#allocation3], 16  }
  0xa5   :  { %184 = vsyncadd [#allocation3], 4294967280 }
  0xa6   :  { %138 = vsyncpa [#allocation3], 1 }

</bundles_post_ra>
